<compile_context>
chip_gen: v7x
topology: tpu7x:2x2x1
jax: 0.10.0
libtpu: 0.0.40
codegen_flags: <defaults>
</compile_context>

<pallas_src>
import functools

import jax
import jax.numpy as jnp
from jax.experimental import pallas as pl
from jax.experimental.pallas import tpu as pltpu


# --------------------------------------------------------------------------
# Pallas kernel factory: one tiled GCN aggregation pass
#   out[i-block] = d_i * ( (A+I)[i,:] @ feat ) @ W  (+ bias, optional relu)
# Grid = (row blocks "parallel", reduction blocks "arbitrary" [last axis]).
# --------------------------------------------------------------------------
def _make_gcn_pass_kernel(fuse_relu_and_rescale):
    def kernel(a_ref, f_ref, w_ref, b_ref, d_ref, o_ref, acc_ref):
        k = pl.program_id(1)

        @pl.when(k == 0)
        def _():
            acc_ref[...] = jnp.zeros_like(acc_ref)

        # (tm, tk) bf16  @  (tk, C) bf16  -> f32 accumulate   (MXU)
        acc_ref[...] += jnp.dot(a_ref[...], f_ref[...],
                                preferred_element_type=jnp.float32)

        @pl.when(k == pl.num_programs(1) - 1)
        def _():
            d = d_ref[...]                                  # (tm, 1) f32
            t = d * jnp.dot(acc_ref[...], w_ref[...],
                            preferred_element_type=jnp.float32) + b_ref[...]
            if fuse_relu_and_rescale:
                # layer-1: h = relu(Â X W1 + b1); pre-scale rows by d so the
                # next aggregation pass can consume it directly.
                t = d * jnp.maximum(t, 0.0)
            o_ref[...] = t.astype(o_ref.dtype)

    return kernel


_layer1_kernel = _make_gcn_pass_kernel(fuse_relu_and_rescale=True)
_heads_kernel = _make_gcn_pass_kernel(fuse_relu_and_rescale=False)


# --------------------------------------------------------------------------
# Plain-JAX glue
# --------------------------------------------------------------------------
def _round_up(x, m):
    return (x + m - 1) // m * m


def _pad2(a, shape):
    return jnp.pad(a, [(0, s - d) for d, s in zip(a.shape, shape)])


def _pick_tile(n_pad, cap=512):
    t = cap
    while n_pad % t != 0:
        t //= 2
    return t


def _build_graph_operands(edge_index, num_nodes, n_pad):
    """Dense (A + I) in bf16 (unscaled) and D^{-1/2} vector in f32."""
    src, dst = edge_index[0], edge_index[1]
    a = jnp.zeros((n_pad, n_pad), jnp.float32)
    a = a.at[dst, src].add(1.0)                       # message flows src -> dst
    idx = jnp.arange(num_nodes)
    a = a.at[idx, idx].add(1.0)                       # self-loops
    deg = jnp.sum(a, axis=1)
    safe = jnp.where(deg > 0, deg, 1.0)
    d_inv_sqrt = jnp.where(deg > 0, jax.lax.rsqrt(safe), 0.0)
    return a.astype(jnp.bfloat16), d_inv_sqrt.astype(jnp.float32)


def _gcn_pass(kernel, a_bf16, feat_bf16, w, b, d_col, *,
              n_pad, tm, tk, c_in, c_out, out_dtype, cparams):
    grid = (n_pad // tm, n_pad // tk)
    return pl.pallas_call(
        kernel,
        out_shape=jax.ShapeDtypeStruct((n_pad, c_out), out_dtype),
        grid_spec=pltpu.PrefetchScalarGridSpec(
            num_scalar_prefetch=0,
            grid=grid,
            in_specs=[
                pl.BlockSpec((tm, tk), lambda i, k: (i, k)),        # A tile
                pl.BlockSpec((tk, c_in), lambda i, k: (k, 0)),      # features
                pl.BlockSpec((c_in, c_out), lambda i, k: (0, 0)),   # weight
                pl.BlockSpec((1, c_out), lambda i, k: (0, 0)),      # bias
                pl.BlockSpec((tm, 1), lambda i, k: (i, 0)),         # d rows
            ],
            out_specs=pl.BlockSpec((tm, c_out), lambda i, k: (i, 0)),
            scratch_shapes=[pltpu.VMEM((tm, c_in), jnp.float32)],
        ),
        compiler_params=cparams,
    )(a_bf16, feat_bf16, w, b, d_col)


@functools.partial(jax.jit, static_argnames=("tile_cap",))
def encoder_forward(x, edge_index, params, *, tile_cap=512):
    w1, b1, wmu, bmu, wls, bls = params
    n, in_c = x.shape
    hid_c = w1.shape[1]
    out_c = wmu.shape[1]

    # lane-dense padded sizes (multiples of 128)
    n_pad = _round_up(max(n, 128), 128)
    cin_p = _round_up(in_c, 128)
    hid_p = _round_up(hid_c, 128)
    heads_p = _round_up(2 * out_c, 128)

    a_bf16, d_inv_sqrt = _build_graph_operands(edge_index, n, n_pad)
    d_col = d_inv_sqrt[:, None]                                   # (n_pad, 1) f32

    # features pre-scaled by D^{-1/2} (folds the column-side normalization)
    x_p = _pad2(x, (n_pad, cin_p))
    xs = (d_col * x_p).astype(jnp.bfloat16)

    # padded weights / biases; the two heads are concatenated -> single matmul
    w1_p = _pad2(w1, (cin_p, hid_p))
    b1_p = _pad2(b1.reshape(1, -1), (1, hid_p))
    wh_p = _pad2(jnp.concatenate([wmu, wls], axis=1), (hid_p, heads_p))
    bh_p = _pad2(jnp.concatenate([bmu.reshape(1, -1), bls.reshape(1, -1)],
                                 axis=1), (1, heads_p))

    tm = tk = _pick_tile(n_pad, tile_cap)
    cparams = pltpu.CompilerParams(
        dimension_semantics=("parallel", "arbitrary"),
        vmem_limit_bytes=48 * 1024 * 1024,   # explicit; fits v7x's 64 MiB TC VMEM
    )

    # pass 1:  hs = d * relu( d * ((A+I) @ (d*x)) @ W1 + b1 )       [bf16]
    hs = _gcn_pass(_layer1_kernel, a_bf16, xs, w1_p, b1_p, d_col,
                   n_pad=n_pad, tm=tm, tk=tk, c_in=cin_p, c_out=hid_p,
                   out_dtype=jnp.bfloat16, cparams=cparams)

    # pass 2:  [mu || logstd] = d * ((A+I) @ hs) @ [Wmu||Wls] + [bmu||bls]
    mu_ls = _gcn_pass(_heads_kernel, a_bf16, hs, wh_p, bh_p, d_col,
                      n_pad=n_pad, tm=tm, tk=tk, c_in=hid_p, c_out=heads_p,
                      out_dtype=jnp.float32, cparams=cparams)

    mu = mu_ls[:n, :out_c]
    logstd = mu_ls[:n, out_c:2 * out_c]
    return mu, logstd


# --------------------------------------------------------------------------
# Pure-JAX f32 reference (torch_geometric GCNConv semantics) for validation
# --------------------------------------------------------------------------
def encoder_reference(x, edge_index, params):
    w1, b1, wmu, bmu, wls, bls = params
    n = x.shape[0]
    src, dst = edge_index[0], edge_index[1]
    a = jnp.zeros((n, n), jnp.float32).at[dst, src].add(1.0) + jnp.eye(n)
    deg = a.sum(axis=1)
    dis = jnp.where(deg > 0, 1.0 / jnp.sqrt(deg), 0.0)
    a_hat = dis[:, None] * a * dis[None, :]
    h = jnp.maximum(a_hat @ (x @ w1) + b1, 0.0)
    return a_hat @ (h @ wmu) + bmu, a_hat @ (h @ wls) + bls


# --------------------------------------------------------------------------
# Deterministic parameter init (mirrors GCNConv's Linear + bias)
# --------------------------------------------------------------------------
def init_params(key, in_channels, hidden_channels, out_channels):
    k1, k2, k3 = jax.random.split(key, 3)
    w1 = jax.random.normal(k1, (in_channels, hidden_channels), jnp.float32) * 0.1
    b1 = jnp.zeros((1, hidden_channels), jnp.float32)
    wmu = jax.random.normal(k2, (hidden_channels, out_channels), jnp.float32) * 0.1
    bmu = jnp.zeros((1, out_channels), jnp.float32)
    wls = jax.random.normal(k3, (hidden_channels, out_channels), jnp.float32) * 0.1
    bls = jnp.zeros((1, out_channels), jnp.float32)
    return (w1, b1, wmu, bmu, wls, bls)


if __name__ == "__main__":
    # Small deterministic problem: 8 nodes, bidirectional ring graph,
    # in_channels=4, hidden_channels=32, out_channels=16.
    N, IN_C, HID_C, OUT_C = 8, 4, 32, 16

    key = jax.random.PRNGKey(0)
    kx, kp = jax.random.split(key)
    x = jax.random.normal(kx, (N, IN_C), jnp.float32)

    src = jnp.arange(N, dtype=jnp.int32)
    dst = (src + 1) % N
    edge_index = jnp.concatenate(
        [jnp.stack([src, dst]), jnp.stack([dst, src])], axis=1)   # [2, 2N]

    params = init_params(kp, IN_C, HID_C, OUT_C)

    mu, logstd = encoder_forward(x, edge_index, params)
    jax.block_until_ready((mu, logstd))

    assert mu.shape == (N, OUT_C) and logstd.shape == (N, OUT_C)
    assert jnp.all(jnp.isfinite(mu)) and jnp.all(jnp.isfinite(logstd))

    # validate bf16-aggregation kernel against f32 reference
    mu_ref, ls_ref = encoder_reference(x, edge_index, params)
    assert float(jnp.max(jnp.abs(mu - mu_ref))) < 5e-2
    assert float(jnp.max(jnp.abs(logstd - ls_ref))) < 5e-2

    print("KERNEL_OK")
</pallas_src>

<mosaic_0001>
module attributes {stable_mosaic.version = 11 : i64} {
  func.func private @main(%arg0: i32) attributes {dimension_semantics = [#tpu.dimension_semantics<core_parallel>], iteration_bounds = array<i64: 2>, tpu.core_type = #tpu.core_type<sc_scalar_subcore>, window_params = []} {
    return
  }
}

module attributes {stable_mosaic.version = 11 : i64} {
  func.func private @main(%arg0: i32) attributes {dimension_semantics = [#tpu.dimension_semantics<core_parallel>], iteration_bounds = array<i64: 2>, tpu.core_type = #tpu.core_type<sc_scalar_subcore>, window_params = []} {
    return
  }
}

module attributes {stable_mosaic.version = 11 : i64} {
  func.func @kernel(%arg0: i32, %arg1: i32, %arg2: memref<128x128xbf16, #tpu.memory_space<vmem>>, %arg3: memref<128x128xbf16, #tpu.memory_space<vmem>>, %arg4: memref<128x128xf32, #tpu.memory_space<vmem>>, %arg5: memref<1x128xf32, #tpu.memory_space<vmem>>, %arg6: memref<128x1xf32, #tpu.memory_space<vmem>>, %arg7: memref<128x128xf32, #tpu.memory_space<vmem>>, %arg8: memref<128x128xf32, #tpu.memory_space<vmem>>) attributes {dimension_semantics = [#tpu.dimension_semantics<parallel>, #tpu.dimension_semantics<arbitrary>], iteration_bounds = array<i64: 1, 1>, scalar_prefetch = 0 : i64, scratch_operands = 1 : i64, tpu.core_type = #tpu.core_type<tc>, window_params = [{transform_indices = @transform_0, window_bounds = array<i64: 128, 128>}, {transform_indices = @transform_1, window_bounds = array<i64: 128, 128>}, {pipeline_mode = #tpu.pipeline_mode<synchronous>, transform_indices = @transform_2, window_bounds = array<i64: 128, 128>}, {pipeline_mode = #tpu.pipeline_mode<synchronous>, transform_indices = @transform_3, window_bounds = array<i64: 1, 128>}, {transform_indices = @transform_4, window_bounds = array<i64: 128, 1>}, {transform_indices = @transform_5, window_bounds = array<i64: 128, 128>}]} {
    %c0_i32 = arith.constant 0 : i32
    %0 = arith.cmpi eq, %arg1, %c0_i32 : i32
    %1 = arith.extui %0 : i1 to i32
    %c0_i32_0 = arith.constant 0 : i32
    %2 = arith.cmpi ne, %1, %c0_i32_0 : i32
    scf.if %2 {
      %cst_10 = arith.constant 0.000000e+00 : f32
      %12 = vector.broadcast %cst_10 : f32 to vector<128x128xf32>
      %c0_11 = arith.constant 0 : index
      %c0_12 = arith.constant 0 : index
      %13 = vector.load %arg8[%c0_11, %c0_12] : memref<128x128xf32, #tpu.memory_space<vmem>>, vector<128x128xf32>
      tpu.vector_store %arg8[%c0_11, %c0_12], %12 {strides = array<i32>} : memref<128x128xf32, #tpu.memory_space<vmem>>, vector<128x128xf32>,
    } else {
    }
    %c0 = arith.constant 0 : index
    %c0_1 = arith.constant 0 : index
    %3 = vector.load %arg8[%c0, %c0_1] : memref<128x128xf32, #tpu.memory_space<vmem>>, vector<128x128xf32>
    %c0_2 = arith.constant 0 : index
    %c0_3 = arith.constant 0 : index
    %4 = vector.load %arg2[%c0_2, %c0_3] : memref<128x128xbf16, #tpu.memory_space<vmem>>, vector<128x128xbf16>
    %c0_4 = arith.constant 0 : index
    %c0_5 = arith.constant 0 : index
    %5 = vector.load %arg3[%c0_4, %c0_5] : memref<128x128xbf16, #tpu.memory_space<vmem>>, vector<128x128xbf16>
    %cst = arith.constant dense<0.000000e+00> : vector<128x128xf32>
    %6 = tpu.matmul %4, %5, %cst {dimension_numbers = #tpu.dot_dimension_numbers<[1], [0], [0], [1], [0, 0, 1, 1], [], []>} : vector<128x128xbf16>, vector<128x128xbf16>, vector<128x128xf32> -> vector<128x128xf32>
    %7 = arith.addf %3, %6 : vector<128x128xf32>
    %c0_6 = arith.constant 0 : index
    %c0_7 = arith.constant 0 : index
    %8 = vector.load %arg8[%c0_6, %c0_7] : memref<128x128xf32, #tpu.memory_space<vmem>>, vector<128x128xf32>
    tpu.vector_store %arg8[%c0_6, %c0_7], %7 {strides = array<i32>} : memref<128x128xf32, #tpu.memory_space<vmem>>, vector<128x128xf32>,
    %c0_i32_8 = arith.constant 0 : i32
    %9 = arith.cmpi eq, %arg1, %c0_i32_8 : i32
    %10 = arith.extui %9 : i1 to i32
    %c0_i32_9 = arith.constant 0 : i32
    %11 = arith.cmpi ne, %10, %c0_i32_9 : i32
    scf.if %11 {
      %c0_10 = arith.constant 0 : index
      %c0_11 = arith.constant 0 : index
      %12 = vector.load %arg6[%c0_10, %c0_11] : memref<128x1xf32, #tpu.memory_space<vmem>>, vector<128x1xf32>
      %c0_12 = arith.constant 0 : index
      %c0_13 = arith.constant 0 : index
      %13 = vector.load %arg8[%c0_12, %c0_13] : memref<128x128xf32, #tpu.memory_space<vmem>>, vector<128x128xf32>
      %c0_14 = arith.constant 0 : index
      %c0_15 = arith.constant 0 : index
      %14 = vector.load %arg4[%c0_14, %c0_15] : memref<128x128xf32, #tpu.memory_space<vmem>>, vector<128x128xf32>
      %cst_16 = arith.constant dense<0.000000e+00> : vector<128x128xf32>
      %15 = tpu.matmul %13, %14, %cst_16 {dimension_numbers = #tpu.dot_dimension_numbers<[1], [0], [0], [1], [0, 0, 1, 1], [], []>} : vector<128x128xf32>, vector<128x128xf32>, vector<128x128xf32> -> vector<128x128xf32>
      %16 = vector.broadcast %12 : vector<128x1xf32> to vector<128x128xf32>
      %17 = arith.mulf %16, %15 : vector<128x128xf32>
      %c0_17 = arith.constant 0 : index
      %c0_18 = arith.constant 0 : index
      %18 = vector.load %arg5[%c0_17, %c0_18] : memref<1x128xf32, #tpu.memory_space<vmem>>, vector<1x128xf32>
      %19 = vector.broadcast %18 : vector<1x128xf32> to vector<128x128xf32>
      %20 = arith.addf %17, %19 : vector<128x128xf32>
      %c0_19 = arith.constant 0 : index
      %c0_20 = arith.constant 0 : index
      %21 = vector.load %arg7[%c0_19, %c0_20] : memref<128x128xf32, #tpu.memory_space<vmem>>, vector<128x128xf32>
      tpu.vector_store %arg7[%c0_19, %c0_20], %20 {strides = array<i32>} : memref<128x128xf32, #tpu.memory_space<vmem>>, vector<128x128xf32>,
    } else {
    }
    return
  }
  func.func @transform_0(%arg0: i32, %arg1: i32) -> (i32, i32) {
    %c0_i32 = arith.constant 0 : i32
    return %arg0, %arg1 : i32, i32
  }
  func.func @transform_1(%arg0: i32, %arg1: i32) -> (i32, i32) {
    %c0_i32 = arith.constant 0 : i32
    %c0_i32_0 = arith.constant 0 : i32
    return %arg1, %c0_i32 : i32, i32
  }
  func.func @transform_2(%arg0: i32, %arg1: i32) -> (i32, i32) {
    %c0_i32 = arith.constant 0 : i32
    %c0_i32_0 = arith.constant 0 : i32
    %c0_i32_1 = arith.constant 0 : i32
    return %c0_i32, %c0_i32_0 : i32, i32
  }
  func.func @transform_3(%arg0: i32, %arg1: i32) -> (i32, i32) {
    %c0_i32 = arith.constant 0 : i32
    %c0_i32_0 = arith.constant 0 : i32
    %c0_i32_1 = arith.constant 0 : i32
    return %c0_i32, %c0_i32_0 : i32, i32
  }
  func.func @transform_4(%arg0: i32, %arg1: i32) -> (i32, i32) {
    %c0_i32 = arith.constant 0 : i32
    %c0_i32_0 = arith.constant 0 : i32
    return %arg0, %c0_i32 : i32, i32
  }
  func.func @transform_5(%arg0: i32, %arg1: i32) -> (i32, i32) {
    %c0_i32 = arith.constant 0 : i32
    %c0_i32_0 = arith.constant 0 : i32
    return %arg0, %c0_i32 : i32, i32
  }
}

module attributes {stable_mosaic.version = 11 : i64} {
  func.func @kernel(%arg0: i32, %arg1: i32, %arg2: memref<128x128xbf16, #tpu.memory_space<vmem>>, %arg3: memref<128x128xbf16, #tpu.memory_space<vmem>>, %arg4: memref<128x128xf32, #tpu.memory_space<vmem>>, %arg5: memref<1x128xf32, #tpu.memory_space<vmem>>, %arg6: memref<128x1xf32, #tpu.memory_space<vmem>>, %arg7: memref<128x128xbf16, #tpu.memory_space<vmem>>, %arg8: memref<128x128xf32, #tpu.memory_space<vmem>>) attributes {dimension_semantics = [#tpu.dimension_semantics<parallel>, #tpu.dimension_semantics<arbitrary>], iteration_bounds = array<i64: 1, 1>, scalar_prefetch = 0 : i64, scratch_operands = 1 : i64, tpu.core_type = #tpu.core_type<tc>, window_params = [{transform_indices = @transform_0, window_bounds = array<i64: 128, 128>}, {transform_indices = @transform_1, window_bounds = array<i64: 128, 128>}, {pipeline_mode = #tpu.pipeline_mode<synchronous>, transform_indices = @transform_2, window_bounds = array<i64: 128, 128>}, {pipeline_mode = #tpu.pipeline_mode<synchronous>, transform_indices = @transform_3, window_bounds = array<i64: 1, 128>}, {transform_indices = @transform_4, window_bounds = array<i64: 128, 1>}, {transform_indices = @transform_5, window_bounds = array<i64: 128, 128>}]} {
    %c0_i32 = arith.constant 0 : i32
    %0 = arith.cmpi eq, %arg1, %c0_i32 : i32
    %1 = arith.extui %0 : i1 to i32
    %c0_i32_0 = arith.constant 0 : i32
    %2 = arith.cmpi ne, %1, %c0_i32_0 : i32
    scf.if %2 {
      %cst_10 = arith.constant 0.000000e+00 : f32
      %12 = vector.broadcast %cst_10 : f32 to vector<128x128xf32>
      %c0_11 = arith.constant 0 : index
      %c0_12 = arith.constant 0 : index
      %13 = vector.load %arg8[%c0_11, %c0_12] : memref<128x128xf32, #tpu.memory_space<vmem>>, vector<128x128xf32>
      tpu.vector_store %arg8[%c0_11, %c0_12], %12 {strides = array<i32>} : memref<128x128xf32, #tpu.memory_space<vmem>>, vector<128x128xf32>,
    } else {
    }
    %c0 = arith.constant 0 : index
    %c0_1 = arith.constant 0 : index
    %3 = vector.load %arg8[%c0, %c0_1] : memref<128x128xf32, #tpu.memory_space<vmem>>, vector<128x128xf32>
    %c0_2 = arith.constant 0 : index
    %c0_3 = arith.constant 0 : index
    %4 = vector.load %arg2[%c0_2, %c0_3] : memref<128x128xbf16, #tpu.memory_space<vmem>>, vector<128x128xbf16>
    %c0_4 = arith.constant 0 : index
    %c0_5 = arith.constant 0 : index
    %5 = vector.load %arg3[%c0_4, %c0_5] : memref<128x128xbf16, #tpu.memory_space<vmem>>, vector<128x128xbf16>
    %cst = arith.constant dense<0.000000e+00> : vector<128x128xf32>
    %6 = tpu.matmul %4, %5, %cst {dimension_numbers = #tpu.dot_dimension_numbers<[1], [0], [0], [1], [0, 0, 1, 1], [], []>} : vector<128x128xbf16>, vector<128x128xbf16>, vector<128x128xf32> -> vector<128x128xf32>
    %7 = arith.addf %3, %6 : vector<128x128xf32>
    %c0_6 = arith.constant 0 : index
    %c0_7 = arith.constant 0 : index
    %8 = vector.load %arg8[%c0_6, %c0_7] : memref<128x128xf32, #tpu.memory_space<vmem>>, vector<128x128xf32>
    tpu.vector_store %arg8[%c0_6, %c0_7], %7 {strides = array<i32>} : memref<128x128xf32, #tpu.memory_space<vmem>>, vector<128x128xf32>,
    %c0_i32_8 = arith.constant 0 : i32
    %9 = arith.cmpi eq, %arg1, %c0_i32_8 : i32
    %10 = arith.extui %9 : i1 to i32
    %c0_i32_9 = arith.constant 0 : i32
    %11 = arith.cmpi ne, %10, %c0_i32_9 : i32
    scf.if %11 {
      %c0_10 = arith.constant 0 : index
      %c0_11 = arith.constant 0 : index
      %12 = vector.load %arg6[%c0_10, %c0_11] : memref<128x1xf32, #tpu.memory_space<vmem>>, vector<128x1xf32>
      %c0_12 = arith.constant 0 : index
      %c0_13 = arith.constant 0 : index
      %13 = vector.load %arg8[%c0_12, %c0_13] : memref<128x128xf32, #tpu.memory_space<vmem>>, vector<128x128xf32>
      %c0_14 = arith.constant 0 : index
      %c0_15 = arith.constant 0 : index
      %14 = vector.load %arg4[%c0_14, %c0_15] : memref<128x128xf32, #tpu.memory_space<vmem>>, vector<128x128xf32>
      %cst_16 = arith.constant dense<0.000000e+00> : vector<128x128xf32>
      %15 = tpu.matmul %13, %14, %cst_16 {dimension_numbers = #tpu.dot_dimension_numbers<[1], [0], [0], [1], [0, 0, 1, 1], [], []>} : vector<128x128xf32>, vector<128x128xf32>, vector<128x128xf32> -> vector<128x128xf32>
      %16 = vector.broadcast %12 : vector<128x1xf32> to vector<128x128xf32>
      %17 = arith.mulf %16, %15 : vector<128x128xf32>
      %c0_17 = arith.constant 0 : index
      %c0_18 = arith.constant 0 : index
      %18 = vector.load %arg5[%c0_17, %c0_18] : memref<1x128xf32, #tpu.memory_space<vmem>>, vector<1x128xf32>
      %19 = vector.broadcast %18 : vector<1x128xf32> to vector<128x128xf32>
      %20 = arith.addf %17, %19 : vector<128x128xf32>
      %cst_19 = arith.constant 0.000000e+00 : f32
      %21 = vector.broadcast %cst_19 : f32 to vector<128x128xf32>
      %22 = arith.maximumf %20, %21 : vector<128x128xf32>
      %23 = vector.broadcast %12 : vector<128x1xf32> to vector<128x128xf32>
      %24 = arith.mulf %23, %22 : vector<128x128xf32>
      %25 = arith.truncf %24 : vector<128x128xf32> to vector<128x128xbf16>
      %c0_20 = arith.constant 0 : index
      %c0_21 = arith.constant 0 : index
      %26 = vector.load %arg7[%c0_20, %c0_21] : memref<128x128xbf16, #tpu.memory_space<vmem>>, vector<128x128xbf16>
      tpu.vector_store %arg7[%c0_20, %c0_21], %25 {strides = array<i32>} : memref<128x128xbf16, #tpu.memory_space<vmem>>, vector<128x128xbf16>,
    } else {
    }
    return
  }
  func.func @transform_0(%arg0: i32, %arg1: i32) -> (i32, i32) {
    %c0_i32 = arith.constant 0 : i32
    return %arg0, %arg1 : i32, i32
  }
  func.func @transform_1(%arg0: i32, %arg1: i32) -> (i32, i32) {
    %c0_i32 = arith.constant 0 : i32
    %c0_i32_0 = arith.constant 0 : i32
    return %arg1, %c0_i32 : i32, i32
  }
  func.func @transform_2(%arg0: i32, %arg1: i32) -> (i32, i32) {
    %c0_i32 = arith.constant 0 : i32
    %c0_i32_0 = arith.constant 0 : i32
    %c0_i32_1 = arith.constant 0 : i32
    return %c0_i32, %c0_i32_0 : i32, i32
  }
  func.func @transform_3(%arg0: i32, %arg1: i32) -> (i32, i32) {
    %c0_i32 = arith.constant 0 : i32
    %c0_i32_0 = arith.constant 0 : i32
    %c0_i32_1 = arith.constant 0 : i32
    return %c0_i32, %c0_i32_0 : i32, i32
  }
  func.func @transform_4(%arg0: i32, %arg1: i32) -> (i32, i32) {
    %c0_i32 = arith.constant 0 : i32
    %c0_i32_0 = arith.constant 0 : i32
    return %arg0, %c0_i32 : i32, i32
  }
  func.func @transform_5(%arg0: i32, %arg1: i32) -> (i32, i32) {
    %c0_i32 = arith.constant 0 : i32
    %c0_i32_0 = arith.constant 0 : i32
    return %arg0, %c0_i32 : i32, i32
  }
}

</mosaic_0001>

<bundles_post_ra>
// kernel: encoder_forward.3
= control target key start
LH: loop header
LB: loop body
LE: loop exit
PB: predicated region body
PF: predicated region fallthrough
CT: control target
= control target key end

     0   :  { %v853_v40 = vmov 0   ;;  %s1097_s1 = inlined_call_operand.vmem [shape: bf16[128,128], index: 1, kind: input, shape index: {}]   ;;  %s1098_s0 = inlined_call_operand.vmem [shape: bf16[128,128], index: 0, kind: input, shape index: {}]   ;;  %s1099_s2 = inlined_call_operand.vmem [shape: f32[128,128], index: 2, kind: input, shape index: {}]   ;;  %s1100_s4 = inlined_call_operand.vmem [shape: f32[128,1], index: 4, kind: input, shape index: {}]   ;;  %s1101_s3 = inlined_call_operand.vmem [shape: f32[1,128], index: 3, kind: input, shape index: {}]   ;;  %s1102_s5 = inlined_call_operand.vmem [shape: f32[128,128], index: 5, kind: output, shape index: {}]  }
   0x1   :  { %v837_v0 = vld [vmem:[%s1097_s1] sm:$0xff]   ;;  %v838_v1 = vld [vmem:[%s1097_s1 + $0x8] sm:$0xff]   ;;  %v839_v2 = vld [vmem:[%s1097_s1 + $0x10] sm:$0xff]   ;;  %836 = vset.pattern.permute.xlu1 %v853_v40  ;;  %835 = vset.pattern.permute.xlu0 %v853_v40 }
   0x2   :  { %714 = vmatprep.subr.bf16.mxu0 %v837_v0  ;;  %v840_v3 = vld [vmem:[%s1097_s1 + $0x18] sm:$0xff]   ;;  %v845_v4 = vld [vmem:[%s1098_s0] sm:$0xff]   ;;  %v842_v6 = vld [vmem:[%s1097_s1 + $0x28] sm:$0xff]  }
   0x3   :  { %715 = vmatpush3.bf16.msra.mxu0 %v837_v0  ;;  %730 = vmatprep.mubr.bf16.mxu0 %v845_v4  ;;  %v841_v5 = vld [vmem:[%s1097_s1 + $0x20] sm:$0xff]   ;;  %v350_v8 = vld [vmem:[%s1099_s2 + $0x8] sm:$0xff]  ;;  %v351_v9 = vld [vmem:[%s1099_s2 + $0x10] sm:$0xff] }
   0x4   :  { %716 = vmatprep.subr.bf16.mxu0 %v838_v1  ;;  %v349_v7 = vld [vmem:[%s1099_s2] sm:$0xff]  ;;  %v352_v11 = vld [vmem:[%s1099_s2 + $0x18] sm:$0xff]  ;;  %v354_v14 = vld [vmem:[%s1099_s2 + $0x28] sm:$0xff] }
   0x5   :  { %v802_v10 = vpack.c.bf16 %v350_v8, %v349_v7  ;;  %v806_v12 = vpack.c.bf16 %v352_v11, %v351_v9  ;;  %v353_v13 = vld [vmem:[%s1099_s2 + $0x20] sm:$0xff]  ;;  %v843_v15 = vld [vmem:[%s1097_s1 + $0x30] sm:$0xff]   ;;  %v356_v18 = vld [vmem:[%s1099_s2 + $0x38] sm:$0xff] }
   0x6   :  { %v810_v16 = vpack.c.bf16 %v354_v14, %v353_v13  ;;  %v355_v17 = vld [vmem:[%s1099_s2 + $0x30] sm:$0xff]  ;;  %v844_v19 = vld [vmem:[%s1097_s1 + $0x38] sm:$0xff]   ;;  %v357_v21 = vld [vmem:[%s1099_s2 + $0x40] sm:$0xff] }
   0x7   :  { %717 = vmatpush3.bf16.msra.mxu0 %v838_v1  ;;  %803 = vmatprep.subr.bf16.mxu1 %v802_v10  ;;  %v814_v20 = vpack.c.bf16 %v356_v18, %v355_v17  ;;  %v358_v22 = vld [vmem:[%s1099_s2 + $0x48] sm:$0xff]  ;;  %v359_v25 = vld [vmem:[%s1099_s2 + $0x50] sm:$0xff]  ;;  %v360_v26 = vld [vmem:[%s1099_s2 + $0x58] sm:$0xff] }
   0x8   :  { %718 = vmatprep.subr.bf16.mxu0 %v839_v2  ;;  %805 = vmatpush3.bf16.msra.mxu1 %v802_v10  ;;  %v818_v23 = vpack.c.bf16 %v358_v22, %v357_v21  ;;  %v846_v24 = vld [vmem:[%s1098_s0 + $0x8] sm:$0xff]   ;;  %v847_v27 = vld [vmem:[%s1098_s0 + $0x10] sm:$0xff]   ;;  %v822_v28 = vpack.c.bf16 %v360_v26, %v359_v25  ;;  %v361_v29 = vld [vmem:[%s1099_s2 + $0x60] sm:$0xff] }
   0x9   :  { %807 = vmatprep.subr.bf16.mxu1 %v806_v12  ;;  %v362_v30 = vld [vmem:[%s1099_s2 + $0x68] sm:$0xff]  ;;  %v848_v32 = vld [vmem:[%s1098_s0 + $0x18] sm:$0xff]   ;;  %v849_v33 = vld [vmem:[%s1098_s0 + $0x20] sm:$0xff]  }
   0xa   :  { %v826_v31 = vpack.c.bf16 %v362_v30, %v361_v29  ;;  %v850_v34 = vld [vmem:[%s1098_s0 + $0x28] sm:$0xff]   ;;  %v851_v35 = vld [vmem:[%s1098_s0 + $0x30] sm:$0xff]   ;;  %v852_v36 = vld [vmem:[%s1098_s0 + $0x38] sm:$0xff]  }
   0xb   :  { %719 = vmatpush3.bf16.msra.mxu0 %v839_v2  ;;  %v363_v37 = vld [vmem:[%s1099_s2 + $0x70] sm:$0xff]  ;;  %v364_v38 = vld [vmem:[%s1099_s2 + $0x78] sm:$0xff]  ;;  %v317_v42 = vld [vmem:[%s1100_s4] sm:$0xff] }
   0xc   :  { %720 = vmatprep.subr.bf16.mxu0 %v840_v3  ;;  %809 = vmatpush3.bf16.msra.mxu1 %v806_v12  ;;  %v830_v39 = vpack.c.bf16 %v364_v38, %v363_v37  ;;  %v319_v41 = vld [vmem:[%s1100_s4 + $0x10] sm:$0xff]  ;;  %v320_v43 = vld [vmem:[%s1100_s4 + $0x18] sm:$0xff]  ;;  %v318_v44 = vld [vmem:[%s1100_s4 + $0x8] sm:$0xff] }
   0xd   :  { %811 = vmatprep.subr.bf16.mxu1 %v810_v16  ;;  %522 = vperm.xlu1 %836, %v319_v41   ;;  %v322_v45 = vld [vmem:[%s1100_s4 + $0x28] sm:$0xff]  ;;  %v321_v46 = vld [vmem:[%s1100_s4 + $0x20] sm:$0xff]  ;;  %v324_v47 = vld [vmem:[%s1100_s4 + $0x38] sm:$0xff] }
   0xe   :  { %512 = vperm.xlu0 %835, %v317_v42   ;;  %v323_v48 = vld [vmem:[%s1100_s4 + $0x30] sm:$0xff]  ;;  %v326_v49 = vld [vmem:[%s1100_s4 + $0x48] sm:$0xff]  ;;  %v325_v50 = vld [vmem:[%s1100_s4 + $0x40] sm:$0xff] }
   0xf   :  { %721 = vmatpush3.bf16.msra.mxu0 %v840_v3  ;;  %v328_v51 = vld [vmem:[%s1100_s4 + $0x58] sm:$0xff]  ;;  %v327_v52 = vld [vmem:[%s1100_s4 + $0x50] sm:$0xff]  ;;  %v330_v53 = vld [vmem:[%s1100_s4 + $0x68] sm:$0xff] }
  0x10   :  { %722 = vmatprep.subr.bf16.mxu0 %v841_v5  ;;  %813 = vmatpush3.bf16.msra.mxu1 %v810_v16  ;;  %v329_v54 = vld [vmem:[%s1100_s4 + $0x60] sm:$0xff]  ;;  %v332_v55 = vld [vmem:[%s1100_s4 + $0x78] sm:$0xff]  ;;  %v331_v56 = vld [vmem:[%s1100_s4 + $0x70] sm:$0xff] }
  0x11   :  { %815 = vmatprep.subr.bf16.mxu1 %v814_v20  ;;  %527 = vperm.xlu1 %836, %v320_v43   ;;  %v1031_v16 = vld [vmem:[%s1101_s3] ss:$0 sm:$0xff] }
  0x12   :  { %517 = vperm.xlu0 %835, %v318_v44  }
  0x13   :  { %723 = vmatpush3.bf16.msra.mxu0 %v841_v5 }
  0x14   :  { %724 = vmatprep.subr.bf16.mxu0 %v842_v6  ;;  %817 = vmatpush3.bf16.msra.mxu1 %v814_v20 }
  0x15   :  { %819 = vmatprep.subr.bf16.mxu1 %v818_v23  ;;  %537 = vperm.xlu1 %836, %v322_v45  }
  0x16   :  { %532 = vperm.xlu0 %835, %v321_v46  }
  0x17   :  { %725 = vmatpush3.bf16.msra.mxu0 %v842_v6 }
  0x18   :  { %726 = vmatprep.subr.bf16.mxu0 %v843_v15  ;;  %821 = vmatpush3.bf16.msra.mxu1 %v818_v23 }
  0x19   :  { %823 = vmatprep.subr.bf16.mxu1 %v822_v28  ;;  %547 = vperm.xlu1 %836, %v324_v47  }
  0x1a   :  { %542 = vperm.xlu0 %835, %v323_v48  }
  0x1b   :  { %727 = vmatpush3.bf16.msra.mxu0 %v843_v15 }
  0x1c   :  { %728 = vmatprep.subr.bf16.mxu0 %v844_v19  ;;  %825 = vmatpush3.bf16.msra.mxu1 %v822_v28 }
  0x1d   :  { %827 = vmatprep.subr.bf16.mxu1 %v826_v31  ;;  %557 = vperm.xlu1 %836, %v326_v49  }
  0x1e   :  { %552 = vperm.xlu0 %835, %v325_v50  }
  0x1f   :  { %729 = vmatpush3.bf16.msra.mxu0 %v844_v19 }
  0x20   :  { %829 = vmatpush3.bf16.msra.mxu1 %v826_v31 }
  0x21   :  { %831 = vmatprep.subr.bf16.mxu1 %v830_v39  ;;  %567 = vperm.xlu1 %836, %v328_v51  }
  0x22   :  { %731 = vmatmul.mubr.bf16.vlgmr.msra.gmra.mrb[0].mxu0 %v846_v24  ;;  %562 = vperm.xlu0 %835, %v327_v52  }
  0x23   :  { %734 = vmatprep.mubr.bf16.mxu0 %v847_v27 }
  0x24   :  { %833 = vmatpush3.bf16.msra.mxu1 %v830_v39 }
  0x25   :  { %577 = vperm.xlu1 %836, %v330_v53  }
  0x26   :  { %572 = vperm.xlu0 %835, %v329_v54  }
  0x29   :  { %587 = vperm.xlu1 %836, %v332_v55  }
  0x2a   :  { %735 = vmatmul.mubr.bf16.gmra.mrb[4].mxu0 %v848_v32  ;;  %582 = vperm.xlu0 %835, %v331_v56  }
  0x2b   :  { %738 = vmatprep.mubr.bf16.mxu0 %v849_v33 }
  0x32   :  { %739 = vmatmul.mubr.bf16.gmra.mrb[8].mxu0 %v850_v34 }
  0x33   :  { %742 = vmatprep.mubr.bf16.mxu0 %v851_v35 }
  0x3a   :  { %743 = vmatmul.mubr.bf16.gmra.mrb[12].mxu0 %v852_v36 }
  0x8c   :  { %v523_v9 = vpop.permute.xlu1 %522 }
  0x8d   :  { %v513_v10 = vpop.permute.xlu0 %512 }
  0x90   :  { %v528_v11 = vpop.permute.xlu1 %527 }
  0x91   :  { %v518_v12 = vpop.permute.xlu0 %517 }
  0x94   :  { %v538_v13 = vpop.permute.xlu1 %537 }
  0x95   :  { %v533_v14 = vpop.permute.xlu0 %532 }
  0x98   :  { %v548_v21 = vpop.permute.xlu1 %547 }
  0x99   :  { %v543_v24 = vpop.permute.xlu0 %542 }
  0x9c   :  { %v558_v33 = vpop.permute.xlu1 %557 }
  0x9d   :  { %v553_v35 = vpop.permute.xlu0 %552 }
  0xa0   :  { %v568_v43 = vpop.permute.xlu1 %567 }
  0xa1   :  { %v563_v46 = vpop.permute.xlu0 %562 }
  0xa4   :  { %v578_v55 = vpop.permute.xlu1 %577 }
  0xf5   :  { %v732_v57 = vpop.f32.mrb[0].mxu0 }
  0xf6   :  { %v219_v58 = vpop.f32.mrb[1].mxu0 }
  0xf7   :  { %v733_v59 = vpop.f32.mrb[2].mxu0  ;;  %778 = vmatprep.mubr.f32.mxu1 %v219_v58 }
  0xf8   :  { %v222_v60 = vpop.f32.mrb[3].mxu0 }
  0xf9   :  { %779 = vmatmul.mubr.f32.vlgmr.msra.gmra.mrb[0].mxu1 %v222_v60 }
  0xfa   :  { %781 = vmatprep.mubr.f32.mxu1 %v732_v57  ;;  %v573_v57 = vpop.permute.xlu0 %572 }
  0xfd   :  { %v736_v61 = vpop.f32.mrb[4].mxu0  ;;  %782 = vmatmul.mubr.f32.gmra.mrb[2].mxu1 %v733_v59 }
  0xfe   :  { %v235_v62 = vpop.f32.mrb[5].mxu0 }
  0xff   :  { %v737_v63 = vpop.f32.mrb[6].mxu0  ;;  %784 = vmatprep.mubr.f32.mxu1 %v235_v62 }
 0x100   :  { %v238_v0 = vpop.f32.mrb[7].mxu0 }
 0x101   :  { %785 = vmatmul.mubr.f32.gmra.mrb[4].mxu1 %v238_v0 }
 0x102   :  { %787 = vmatprep.mubr.f32.mxu1 %v736_v61 }
 0x105   :  { %v740_v1 = vpop.f32.mrb[8].mxu0  ;;  %788 = vmatmul.mubr.f32.gmra.mrb[6].mxu1 %v737_v63 }
 0x106   :  { %v251_v2 = vpop.f32.mrb[9].mxu0 }
 0x107   :  { %v741_v3 = vpop.f32.mrb[10].mxu0  ;;  %790 = vmatprep.mubr.f32.mxu1 %v251_v2 }
 0x108   :  { %v254_v4 = vpop.f32.mrb[11].mxu0 }
 0x109   :  { %791 = vmatmul.mubr.f32.gmra.mrb[8].mxu1 %v254_v4  ;;  %v583_v4 = vpop.permute.xlu0 %582 }
 0x10a   :  { %793 = vmatprep.mubr.f32.mxu1 %v740_v1  ;;  %v588_v1 = vpop.permute.xlu1 %587 }
 0x10d   :  { %v744_v5 = vpop.f32.mrb[12].mxu0  ;;  %794 = vmatmul.mubr.f32.gmra.mrb[10].mxu1 %v741_v3 }
 0x10e   :  { %v267_v6 = vpop.f32.mrb[13].mxu0 }
 0x10f   :  { %v745_v7 = vpop.f32.mrb[14].mxu0  ;;  %796 = vmatprep.mubr.f32.mxu1 %v267_v6 }
 0x110   :  { %v270_v8 = vpop.f32.mrb[15].mxu0 }
 0x111   :  { %797 = vmatmul.mubr.f32.gmra.mrb[12].mxu1 %v270_v8 }
 0x112   :  { %799 = vmatprep.mubr.f32.mxu1 %v744_v5 }
 0x115   :  { %800 = vmatmul.mubr.f32.gmra.mrb[14].mxu1 %v745_v7 }
 0x1cc   :  { %v780_v15 = vpop.f32.mrb[0].mxu1 }
 0x1cd   :  { %v591_v17 = vmul.f32 %v780_v15, %v518_v12  ;;  %v431_v18 = vpop.f32.mrb[1].mxu1 }
 0x1ce   :  { %v590_v19 = vmul.f32 %v513_v10, %v431_v18 }
 0x1cf   :  { %v614_v20 = vadd.f32 %v1031_v16, %v591_v17 }
 0x1d0   :  { %v613_v22 = vadd.f32 %v1031_v16, %v590_v19  ;;  %v783_v23 = vpop.f32.mrb[2].mxu1 }
 0x1d1   :  { %630 = vst [vmem:[%s1102_s5 + $0x8] sm:$0xff] %v614_v20  ;;  %v593_v25 = vmul.f32 %v783_v23, %v528_v11  ;;  %v441_v26 = vpop.f32.mrb[3].mxu1 }
 0x1d2   :  { %629 = vst [vmem:[%s1102_s5] sm:$0xff] %v613_v22  ;;  %v592_v27 = vmul.f32 %v523_v9, %v441_v26 }
 0x1d3   :  { %v616_v28 = vadd.f32 %v1031_v16, %v593_v25 }
 0x1d4   :  { %v615_v29 = vadd.f32 %v1031_v16, %v592_v27  ;;  %v786_v30 = vpop.f32.mrb[4].mxu1 }
 0x1d5   :  { %632 = vst [vmem:[%s1102_s5 + $0x18] sm:$0xff] %v616_v28  ;;  %v595_v31 = vmul.f32 %v786_v30, %v538_v13  ;;  %v451_v32 = vpop.f32.mrb[5].mxu1 }
 0x1d6   :  { %631 = vst [vmem:[%s1102_s5 + $0x10] sm:$0xff] %v615_v29  ;;  %v594_v34 = vmul.f32 %v533_v14, %v451_v32 }
 0x1d7   :  { %v618_v36 = vadd.f32 %v1031_v16, %v595_v31 }
 0x1d8   :  { %v617_v37 = vadd.f32 %v1031_v16, %v594_v34  ;;  %v789_v38 = vpop.f32.mrb[6].mxu1 }
 0x1d9   :  { %634 = vst [vmem:[%s1102_s5 + $0x28] sm:$0xff] %v618_v36  ;;  %v597_v39 = vmul.f32 %v789_v38, %v548_v21  ;;  %v461_v40 = vpop.f32.mrb[7].mxu1 }
 0x1da   :  { %633 = vst [vmem:[%s1102_s5 + $0x20] sm:$0xff] %v617_v37  ;;  %v596_v41 = vmul.f32 %v543_v24, %v461_v40 }
 0x1db   :  { %v620_v42 = vadd.f32 %v1031_v16, %v597_v39 }
 0x1dc   :  { %v619_v44 = vadd.f32 %v1031_v16, %v596_v41  ;;  %v792_v45 = vpop.f32.mrb[8].mxu1 }
 0x1dd   :  { %636 = vst [vmem:[%s1102_s5 + $0x38] sm:$0xff] %v620_v42  ;;  %v599_v47 = vmul.f32 %v792_v45, %v558_v33  ;;  %v471_v48 = vpop.f32.mrb[9].mxu1 }
 0x1de   :  { %635 = vst [vmem:[%s1102_s5 + $0x30] sm:$0xff] %v619_v44  ;;  %v598_v49 = vmul.f32 %v553_v35, %v471_v48 }
 0x1df   :  { %v622_v50 = vadd.f32 %v1031_v16, %v599_v47 }
 0x1e0   :  { %v621_v51 = vadd.f32 %v1031_v16, %v598_v49  ;;  %v795_v52 = vpop.f32.mrb[10].mxu1 }
 0x1e1   :  { %638 = vst [vmem:[%s1102_s5 + $0x48] sm:$0xff] %v622_v50  ;;  %v601_v53 = vmul.f32 %v795_v52, %v568_v43  ;;  %v481_v54 = vpop.f32.mrb[11].mxu1 }
 0x1e2   :  { %637 = vst [vmem:[%s1102_s5 + $0x40] sm:$0xff] %v621_v51  ;;  %v600_v56 = vmul.f32 %v563_v46, %v481_v54 }
 0x1e3   :  { %v624_v58 = vadd.f32 %v1031_v16, %v601_v53 }
 0x1e4   :  { %v623_v59 = vadd.f32 %v1031_v16, %v600_v56  ;;  %v798_v60 = vpop.f32.mrb[12].mxu1 }
 0x1e5   :  { %640 = vst [vmem:[%s1102_s5 + $0x58] sm:$0xff] %v624_v58  ;;  %v603_v61 = vmul.f32 %v798_v60, %v578_v55  ;;  %v491_v62 = vpop.f32.mrb[13].mxu1 }
 0x1e6   :  { %639 = vst [vmem:[%s1102_s5 + $0x50] sm:$0xff] %v623_v59  ;;  %v602_v63 = vmul.f32 %v573_v57, %v491_v62 }
 0x1e7   :  { %v626_v0 = vadd.f32 %v1031_v16, %v603_v61 }
 0x1e8   :  { %v625_v2 = vadd.f32 %v1031_v16, %v602_v63  ;;  %v801_v3 = vpop.f32.mrb[14].mxu1 }
 0x1e9   :  { %642 = vst [vmem:[%s1102_s5 + $0x68] sm:$0xff] %v626_v0  ;;  %v605_v5 = vmul.f32 %v801_v3, %v588_v1  ;;  %v501_v6 = vpop.f32.mrb[15].mxu1 }
 0x1ea   :  { %641 = vst [vmem:[%s1102_s5 + $0x60] sm:$0xff] %v625_v2  ;;  %v604_v7 = vmul.f32 %v583_v4, %v501_v6 }
 0x1eb   :  { %v628_v8 = vadd.f32 %v1031_v16, %v605_v5 }
 0x1ec   :  { %v627_v9 = vadd.f32 %v1031_v16, %v604_v7 }
 0x1ed   :  { %644 = vst [vmem:[%s1102_s5 + $0x78] sm:$0xff] %v628_v8 }
 0x1ee   :  { %643 = vst [vmem:[%s1102_s5 + $0x70] sm:$0xff] %v627_v9 }

// kernel: encoder_forward.2
= control target key start
LH: loop header
LB: loop body
LE: loop exit
PB: predicated region body
PF: predicated region fallthrough
CT: control target
= control target key end

     0   :  { %v1028_v40 = vmov 0   ;;  %s1248_s1 = inlined_call_operand.vmem [shape: bf16[128,128], index: 1, kind: input, shape index: {}]   ;;  %s1249_s0 = inlined_call_operand.vmem [shape: bf16[128,128], index: 0, kind: input, shape index: {}]   ;;  %s1250_s2 = inlined_call_operand.vmem [shape: f32[128,128], index: 2, kind: input, shape index: {}]   ;;  %s1251_s4 = inlined_call_operand.vmem [shape: f32[128,1], index: 4, kind: input, shape index: {}]   ;;  %s1252_s3 = inlined_call_operand.vmem [shape: f32[1,128], index: 3, kind: input, shape index: {}]   ;;  %s1253_s5 = inlined_call_operand.vmem [shape: bf16[128,128], index: 5, kind: output, shape index: {}]  }
   0x1   :  { %v1012_v0 = vld [vmem:[%s1248_s1] sm:$0xff]   ;;  %v1013_v1 = vld [vmem:[%s1248_s1 + $0x8] sm:$0xff]   ;;  %v1014_v2 = vld [vmem:[%s1248_s1 + $0x10] sm:$0xff]   ;;  %1011 = vset.pattern.permute.xlu1 %v1028_v40  ;;  %1010 = vset.pattern.permute.xlu0 %v1028_v40 }
   0x2   :  { %889 = vmatprep.subr.bf16.mxu0 %v1012_v0  ;;  %v1015_v3 = vld [vmem:[%s1248_s1 + $0x18] sm:$0xff]   ;;  %v1020_v4 = vld [vmem:[%s1249_s0] sm:$0xff]   ;;  %v1017_v6 = vld [vmem:[%s1248_s1 + $0x28] sm:$0xff]  }
   0x3   :  { %890 = vmatpush3.bf16.msra.mxu0 %v1012_v0  ;;  %905 = vmatprep.mubr.bf16.mxu0 %v1020_v4  ;;  %v1016_v5 = vld [vmem:[%s1248_s1 + $0x20] sm:$0xff]   ;;  %v350_v8 = vld [vmem:[%s1250_s2 + $0x8] sm:$0xff]  ;;  %v351_v9 = vld [vmem:[%s1250_s2 + $0x10] sm:$0xff] }
   0x4   :  { %891 = vmatprep.subr.bf16.mxu0 %v1013_v1  ;;  %v349_v7 = vld [vmem:[%s1250_s2] sm:$0xff]  ;;  %v352_v11 = vld [vmem:[%s1250_s2 + $0x18] sm:$0xff]  ;;  %v354_v14 = vld [vmem:[%s1250_s2 + $0x28] sm:$0xff] }
   0x5   :  { %v977_v10 = vpack.c.bf16 %v350_v8, %v349_v7  ;;  %v981_v12 = vpack.c.bf16 %v352_v11, %v351_v9  ;;  %v353_v13 = vld [vmem:[%s1250_s2 + $0x20] sm:$0xff]  ;;  %v1018_v15 = vld [vmem:[%s1248_s1 + $0x30] sm:$0xff]   ;;  %v356_v18 = vld [vmem:[%s1250_s2 + $0x38] sm:$0xff] }
   0x6   :  { %v985_v16 = vpack.c.bf16 %v354_v14, %v353_v13  ;;  %v355_v17 = vld [vmem:[%s1250_s2 + $0x30] sm:$0xff]  ;;  %v1019_v19 = vld [vmem:[%s1248_s1 + $0x38] sm:$0xff]   ;;  %v357_v21 = vld [vmem:[%s1250_s2 + $0x40] sm:$0xff] }
   0x7   :  { %892 = vmatpush3.bf16.msra.mxu0 %v1013_v1  ;;  %978 = vmatprep.subr.bf16.mxu1 %v977_v10  ;;  %v989_v20 = vpack.c.bf16 %v356_v18, %v355_v17  ;;  %v358_v22 = vld [vmem:[%s1250_s2 + $0x48] sm:$0xff]  ;;  %v359_v25 = vld [vmem:[%s1250_s2 + $0x50] sm:$0xff]  ;;  %v360_v26 = vld [vmem:[%s1250_s2 + $0x58] sm:$0xff] }
   0x8   :  { %893 = vmatprep.subr.bf16.mxu0 %v1014_v2  ;;  %980 = vmatpush3.bf16.msra.mxu1 %v977_v10  ;;  %v993_v23 = vpack.c.bf16 %v358_v22, %v357_v21  ;;  %v1021_v24 = vld [vmem:[%s1249_s0 + $0x8] sm:$0xff]   ;;  %v1022_v27 = vld [vmem:[%s1249_s0 + $0x10] sm:$0xff]   ;;  %v997_v28 = vpack.c.bf16 %v360_v26, %v359_v25  ;;  %v361_v29 = vld [vmem:[%s1250_s2 + $0x60] sm:$0xff] }
   0x9   :  { %982 = vmatprep.subr.bf16.mxu1 %v981_v12  ;;  %v362_v30 = vld [vmem:[%s1250_s2 + $0x68] sm:$0xff]  ;;  %v1023_v32 = vld [vmem:[%s1249_s0 + $0x18] sm:$0xff]   ;;  %v1024_v33 = vld [vmem:[%s1249_s0 + $0x20] sm:$0xff]  }
   0xa   :  { %v1001_v31 = vpack.c.bf16 %v362_v30, %v361_v29  ;;  %v1025_v34 = vld [vmem:[%s1249_s0 + $0x28] sm:$0xff]   ;;  %v1026_v35 = vld [vmem:[%s1249_s0 + $0x30] sm:$0xff]   ;;  %v1027_v36 = vld [vmem:[%s1249_s0 + $0x38] sm:$0xff]  }
   0xb   :  { %894 = vmatpush3.bf16.msra.mxu0 %v1014_v2  ;;  %v363_v37 = vld [vmem:[%s1250_s2 + $0x70] sm:$0xff]  ;;  %v364_v38 = vld [vmem:[%s1250_s2 + $0x78] sm:$0xff]  ;;  %v317_v42 = vld [vmem:[%s1251_s4] sm:$0xff] }
   0xc   :  { %895 = vmatprep.subr.bf16.mxu0 %v1015_v3  ;;  %984 = vmatpush3.bf16.msra.mxu1 %v981_v12  ;;  %v1005_v39 = vpack.c.bf16 %v364_v38, %v363_v37  ;;  %v319_v41 = vld [vmem:[%s1251_s4 + $0x10] sm:$0xff]  ;;  %v320_v43 = vld [vmem:[%s1251_s4 + $0x18] sm:$0xff]  ;;  %v318_v44 = vld [vmem:[%s1251_s4 + $0x8] sm:$0xff] }
   0xd   :  { %986 = vmatprep.subr.bf16.mxu1 %v985_v16  ;;  %522 = vperm.xlu1 %1011, %v319_v41   ;;  %v322_v45 = vld [vmem:[%s1251_s4 + $0x28] sm:$0xff]  ;;  %v321_v46 = vld [vmem:[%s1251_s4 + $0x20] sm:$0xff]  ;;  %v324_v47 = vld [vmem:[%s1251_s4 + $0x38] sm:$0xff] }
   0xe   :  { %512 = vperm.xlu0 %1010, %v317_v42   ;;  %v323_v48 = vld [vmem:[%s1251_s4 + $0x30] sm:$0xff]  ;;  %v326_v49 = vld [vmem:[%s1251_s4 + $0x48] sm:$0xff]  ;;  %v325_v50 = vld [vmem:[%s1251_s4 + $0x40] sm:$0xff] }
   0xf   :  { %896 = vmatpush3.bf16.msra.mxu0 %v1015_v3  ;;  %v328_v51 = vld [vmem:[%s1251_s4 + $0x58] sm:$0xff]  ;;  %v327_v52 = vld [vmem:[%s1251_s4 + $0x50] sm:$0xff]  ;;  %v330_v53 = vld [vmem:[%s1251_s4 + $0x68] sm:$0xff] }
  0x10   :  { %897 = vmatprep.subr.bf16.mxu0 %v1016_v5  ;;  %988 = vmatpush3.bf16.msra.mxu1 %v985_v16  ;;  %v329_v54 = vld [vmem:[%s1251_s4 + $0x60] sm:$0xff]  ;;  %v332_v55 = vld [vmem:[%s1251_s4 + $0x78] sm:$0xff]  ;;  %v331_v56 = vld [vmem:[%s1251_s4 + $0x70] sm:$0xff] }
  0x11   :  { %990 = vmatprep.subr.bf16.mxu1 %v989_v20  ;;  %527 = vperm.xlu1 %1011, %v320_v43   ;;  %v1206_v16 = vld [vmem:[%s1252_s3] ss:$0 sm:$0xff] }
  0x12   :  { %517 = vperm.xlu0 %1010, %v318_v44  }
  0x13   :  { %898 = vmatpush3.bf16.msra.mxu0 %v1016_v5 }
  0x14   :  { %899 = vmatprep.subr.bf16.mxu0 %v1017_v6  ;;  %992 = vmatpush3.bf16.msra.mxu1 %v989_v20 }
  0x15   :  { %994 = vmatprep.subr.bf16.mxu1 %v993_v23  ;;  %537 = vperm.xlu1 %1011, %v322_v45  }
  0x16   :  { %532 = vperm.xlu0 %1010, %v321_v46  }
  0x17   :  { %900 = vmatpush3.bf16.msra.mxu0 %v1017_v6 }
  0x18   :  { %901 = vmatprep.subr.bf16.mxu0 %v1018_v15  ;;  %996 = vmatpush3.bf16.msra.mxu1 %v993_v23 }
  0x19   :  { %998 = vmatprep.subr.bf16.mxu1 %v997_v28  ;;  %547 = vperm.xlu1 %1011, %v324_v47  }
  0x1a   :  { %542 = vperm.xlu0 %1010, %v323_v48  }
  0x1b   :  { %902 = vmatpush3.bf16.msra.mxu0 %v1018_v15 }
  0x1c   :  { %903 = vmatprep.subr.bf16.mxu0 %v1019_v19  ;;  %1000 = vmatpush3.bf16.msra.mxu1 %v997_v28 }
  0x1d   :  { %1002 = vmatprep.subr.bf16.mxu1 %v1001_v31  ;;  %557 = vperm.xlu1 %1011, %v326_v49  }
  0x1e   :  { %552 = vperm.xlu0 %1010, %v325_v50  }
  0x1f   :  { %904 = vmatpush3.bf16.msra.mxu0 %v1019_v19 }
  0x20   :  { %1004 = vmatpush3.bf16.msra.mxu1 %v1001_v31 }
  0x21   :  { %1006 = vmatprep.subr.bf16.mxu1 %v1005_v39  ;;  %567 = vperm.xlu1 %1011, %v328_v51  }
  0x22   :  { %906 = vmatmul.mubr.bf16.vlgmr.msra.gmra.mrb[0].mxu0 %v1021_v24  ;;  %562 = vperm.xlu0 %1010, %v327_v52  }
  0x23   :  { %909 = vmatprep.mubr.bf16.mxu0 %v1022_v27 }
  0x24   :  { %1008 = vmatpush3.bf16.msra.mxu1 %v1005_v39 }
  0x25   :  { %577 = vperm.xlu1 %1011, %v330_v53  }
  0x26   :  { %572 = vperm.xlu0 %1010, %v329_v54  }
  0x29   :  { %587 = vperm.xlu1 %1011, %v332_v55  }
  0x2a   :  { %910 = vmatmul.mubr.bf16.gmra.mrb[4].mxu0 %v1023_v32  ;;  %582 = vperm.xlu0 %1010, %v331_v56  }
  0x2b   :  { %913 = vmatprep.mubr.bf16.mxu0 %v1024_v33 }
  0x32   :  { %914 = vmatmul.mubr.bf16.gmra.mrb[8].mxu0 %v1025_v34 }
  0x33   :  { %917 = vmatprep.mubr.bf16.mxu0 %v1026_v35 }
  0x3a   :  { %918 = vmatmul.mubr.bf16.gmra.mrb[12].mxu0 %v1027_v36 }
  0x8c   :  { %v523_v9 = vpop.permute.xlu1 %522 }
  0x8d   :  { %v513_v10 = vpop.permute.xlu0 %512 }
  0x90   :  { %v528_v11 = vpop.permute.xlu1 %527 }
  0x91   :  { %v518_v12 = vpop.permute.xlu0 %517 }
  0x94   :  { %v538_v13 = vpop.permute.xlu1 %537 }
  0x95   :  { %v533_v14 = vpop.permute.xlu0 %532 }
  0x98   :  { %v548_v21 = vpop.permute.xlu1 %547 }
  0x99   :  { %v543_v24 = vpop.permute.xlu0 %542 }
  0x9c   :  { %v558_v38 = vpop.permute.xlu1 %557 }
  0x9d   :  { %v553_v42 = vpop.permute.xlu0 %552 }
  0xa0   :  { %v568_v56 = vpop.permute.xlu1 %567 }
  0xf5   :  { %v907_v57 = vpop.f32.mrb[0].mxu0 }
  0xf6   :  { %v219_v58 = vpop.f32.mrb[1].mxu0 }
  0xf7   :  { %v908_v59 = vpop.f32.mrb[2].mxu0  ;;  %953 = vmatprep.mubr.f32.mxu1 %v219_v58 }
  0xf8   :  { %v222_v60 = vpop.f32.mrb[3].mxu0 }
  0xf9   :  { %954 = vmatmul.mubr.f32.vlgmr.msra.gmra.mrb[0].mxu1 %v222_v60  ;;  %v563_v60 = vpop.permute.xlu0 %562 }
  0xfa   :  { %956 = vmatprep.mubr.f32.mxu1 %v907_v57 }
  0xfd   :  { %v911_v61 = vpop.f32.mrb[4].mxu0  ;;  %957 = vmatmul.mubr.f32.gmra.mrb[2].mxu1 %v908_v59 }
  0xfe   :  { %v235_v62 = vpop.f32.mrb[5].mxu0 }
  0xff   :  { %v912_v63 = vpop.f32.mrb[6].mxu0  ;;  %959 = vmatprep.mubr.f32.mxu1 %v235_v62 }
 0x100   :  { %v238_v0 = vpop.f32.mrb[7].mxu0 }
 0x101   :  { %960 = vmatmul.mubr.f32.gmra.mrb[4].mxu1 %v238_v0 }
 0x102   :  { %962 = vmatprep.mubr.f32.mxu1 %v911_v61 }
 0x105   :  { %v915_v1 = vpop.f32.mrb[8].mxu0  ;;  %963 = vmatmul.mubr.f32.gmra.mrb[6].mxu1 %v912_v63 }
 0x106   :  { %v251_v2 = vpop.f32.mrb[9].mxu0 }
 0x107   :  { %v916_v3 = vpop.f32.mrb[10].mxu0  ;;  %965 = vmatprep.mubr.f32.mxu1 %v251_v2 }
 0x108   :  { %v254_v4 = vpop.f32.mrb[11].mxu0 }
 0x109   :  { %966 = vmatmul.mubr.f32.gmra.mrb[8].mxu1 %v254_v4 }
 0x10a   :  { %968 = vmatprep.mubr.f32.mxu1 %v915_v1 }
 0x10d   :  { %v919_v5 = vpop.f32.mrb[12].mxu0  ;;  %969 = vmatmul.mubr.f32.gmra.mrb[10].mxu1 %v916_v3 }
 0x10e   :  { %v267_v6 = vpop.f32.mrb[13].mxu0 }
 0x10f   :  { %v920_v7 = vpop.f32.mrb[14].mxu0  ;;  %971 = vmatprep.mubr.f32.mxu1 %v267_v6 }
 0x110   :  { %v270_v8 = vpop.f32.mrb[15].mxu0 }
 0x111   :  { %972 = vmatmul.mubr.f32.gmra.mrb[12].mxu1 %v270_v8 }
 0x112   :  { %974 = vmatprep.mubr.f32.mxu1 %v919_v5 }
 0x115   :  { %975 = vmatmul.mubr.f32.gmra.mrb[14].mxu1 %v920_v7 }
 0x1cc   :  { %v955_v15 = vpop.f32.mrb[0].mxu1 }
 0x1cd   :  { %v591_v17 = vmul.f32 %v955_v15, %v518_v12  ;;  %v431_v18 = vpop.f32.mrb[1].mxu1  ;;  %v573_v15 = vpop.permute.xlu0 %572 }
 0x1ce   :  { %v590_v19 = vmul.f32 %v513_v10, %v431_v18 }
 0x1cf   :  { %v614_v20 = vadd.f32 %v1206_v16, %v591_v17 }
 0x1d0   :  { %v613_v22 = vadd.f32 %v1206_v16, %v590_v19  ;;  %v958_v23 = vpop.f32.mrb[2].mxu1 }
 0x1d1   :  { %v630_v25 = vmax.f32 %v614_v20, 0.0  ;;  %v593_v26 = vmul.f32 %v958_v23, %v528_v11  ;;  %v441_v27 = vpop.f32.mrb[3].mxu1 }
 0x1d2   :  { %v629_v28 = vmax.f32 %v613_v22, 0.0  ;;  %v592_v29 = vmul.f32 %v523_v9, %v441_v27 }
 0x1d3   :  { %v646_v30 = vmul.f32 %v630_v25, %v518_v12  ;;  %v616_v31 = vadd.f32 %v1206_v16, %v593_v26 }
 0x1d4   :  { %v645_v32 = vmul.f32 %v629_v28, %v513_v10  ;;  %v615_v33 = vadd.f32 %v1206_v16, %v592_v29  ;;  %v961_v34 = vpop.f32.mrb[4].mxu1 }
 0x1d5   :  { %v632_v35 = vmax.f32 %v616_v31, 0.0  ;;  %v595_v36 = vmul.f32 %v961_v34, %v538_v13  ;;  %v451_v37 = vpop.f32.mrb[5].mxu1  ;;  %v583_v34 = vpop.permute.xlu0 %582 }
 0x1d6   :  { %v797_v39 = vpack.c.bf16 %v646_v30, %v645_v32  ;;  %v631_v40 = vmax.f32 %v615_v33, 0.0  ;;  %v594_v41 = vmul.f32 %v533_v14, %v451_v37 }
 0x1d7   :  { %v648_v43 = vmul.f32 %v632_v35, %v528_v11  ;;  %v618_v44 = vadd.f32 %v1206_v16, %v595_v36  ;;  %v578_v11 = vpop.permute.xlu1 %577 }
 0x1d8   :  { %798 = vst [vmem:[%s1253_s5] sm:$0xff] %v797_v39   ;;  %v647_v45 = vmul.f32 %v631_v40, %v523_v9  ;;  %v617_v46 = vadd.f32 %v1206_v16, %v594_v41  ;;  %v964_v47 = vpop.f32.mrb[6].mxu1 }
 0x1d9   :  { %v634_v48 = vmax.f32 %v618_v44, 0.0  ;;  %v597_v49 = vmul.f32 %v964_v47, %v548_v21  ;;  %v461_v50 = vpop.f32.mrb[7].mxu1 }
 0x1da   :  { %v802_v51 = vpack.c.bf16 %v648_v43, %v647_v45  ;;  %v633_v52 = vmax.f32 %v617_v46, 0.0  ;;  %v596_v53 = vmul.f32 %v543_v24, %v461_v50 }
 0x1db   :  { %v650_v54 = vmul.f32 %v634_v48, %v538_v13  ;;  %v620_v55 = vadd.f32 %v1206_v16, %v597_v49  ;;  %v588_v30 = vpop.permute.xlu1 %587 }
 0x1dc   :  { %834 = vst [vmem:[%s1253_s5 + $0x8] sm:$0xff] %v802_v51   ;;  %v649_v57 = vmul.f32 %v633_v52, %v533_v14  ;;  %v619_v58 = vadd.f32 %v1206_v16, %v596_v53  ;;  %v967_v59 = vpop.f32.mrb[8].mxu1 }
 0x1dd   :  { %v636_v61 = vmax.f32 %v620_v55, 0.0  ;;  %v599_v62 = vmul.f32 %v967_v59, %v558_v38  ;;  %v471_v63 = vpop.f32.mrb[9].mxu1 }
 0x1de   :  { %v807_v0 = vpack.c.bf16 %v650_v54, %v649_v57  ;;  %v635_v1 = vmax.f32 %v619_v58, 0.0  ;;  %v598_v2 = vmul.f32 %v553_v42, %v471_v63 }
 0x1df   :  { %v652_v3 = vmul.f32 %v636_v61, %v548_v21  ;;  %v622_v4 = vadd.f32 %v1206_v16, %v599_v62 }
 0x1e0   :  { %835 = vst [vmem:[%s1253_s5 + $0x10] sm:$0xff] %v807_v0   ;;  %v651_v5 = vmul.f32 %v635_v1, %v543_v24  ;;  %v621_v6 = vadd.f32 %v1206_v16, %v598_v2  ;;  %v970_v7 = vpop.f32.mrb[10].mxu1 }
 0x1e1   :  { %v638_v8 = vmax.f32 %v622_v4, 0.0  ;;  %v601_v9 = vmul.f32 %v970_v7, %v568_v56  ;;  %v481_v10 = vpop.f32.mrb[11].mxu1 }
 0x1e2   :  { %v812_v12 = vpack.c.bf16 %v652_v3, %v651_v5  ;;  %v637_v13 = vmax.f32 %v621_v6, 0.0  ;;  %v600_v14 = vmul.f32 %v563_v60, %v481_v10 }
 0x1e3   :  { %v654_v17 = vmul.f32 %v638_v8, %v558_v38  ;;  %v624_v18 = vadd.f32 %v1206_v16, %v601_v9 }
 0x1e4   :  { %836 = vst [vmem:[%s1253_s5 + $0x18] sm:$0xff] %v812_v12   ;;  %v653_v19 = vmul.f32 %v637_v13, %v553_v42  ;;  %v623_v20 = vadd.f32 %v1206_v16, %v600_v14  ;;  %v973_v21 = vpop.f32.mrb[12].mxu1 }
 0x1e5   :  { %v640_v22 = vmax.f32 %v624_v18, 0.0  ;;  %v603_v23 = vmul.f32 %v973_v21, %v578_v11  ;;  %v491_v24 = vpop.f32.mrb[13].mxu1 }
 0x1e6   :  { %v817_v25 = vpack.c.bf16 %v654_v17, %v653_v19  ;;  %v639_v26 = vmax.f32 %v623_v20, 0.0  ;;  %v602_v27 = vmul.f32 %v573_v15, %v491_v24 }
 0x1e7   :  { %v656_v28 = vmul.f32 %v640_v22, %v568_v56  ;;  %v626_v29 = vadd.f32 %v1206_v16, %v603_v23 }
 0x1e8   :  { %837 = vst [vmem:[%s1253_s5 + $0x20] sm:$0xff] %v817_v25   ;;  %v655_v31 = vmul.f32 %v639_v26, %v563_v60  ;;  %v625_v32 = vadd.f32 %v1206_v16, %v602_v27  ;;  %v976_v33 = vpop.f32.mrb[14].mxu1 }
 0x1e9   :  { %v642_v35 = vmax.f32 %v626_v29, 0.0  ;;  %v605_v36 = vmul.f32 %v976_v33, %v588_v30  ;;  %v501_v37 = vpop.f32.mrb[15].mxu1 }
 0x1ea   :  { %v822_v38 = vpack.c.bf16 %v656_v28, %v655_v31  ;;  %v641_v39 = vmax.f32 %v625_v32, 0.0  ;;  %v604_v40 = vmul.f32 %v583_v34, %v501_v37 }
 0x1eb   :  { %v658_v41 = vmul.f32 %v642_v35, %v578_v11  ;;  %v628_v42 = vadd.f32 %v1206_v16, %v605_v36 }
 0x1ec   :  { %838 = vst [vmem:[%s1253_s5 + $0x28] sm:$0xff] %v822_v38   ;;  %v657_v43 = vmul.f32 %v641_v39, %v573_v15  ;;  %v627_v44 = vadd.f32 %v1206_v16, %v604_v40 }
 0x1ed   :  { %v644_v45 = vmax.f32 %v628_v42, 0.0 }
 0x1ee   :  { %v827_v46 = vpack.c.bf16 %v658_v41, %v657_v43  ;;  %v643_v47 = vmax.f32 %v627_v44, 0.0 }
 0x1ef   :  { %v660_v48 = vmul.f32 %v644_v45, %v588_v30 }
 0x1f0   :  { %839 = vst [vmem:[%s1253_s5 + $0x30] sm:$0xff] %v827_v46   ;;  %v659_v49 = vmul.f32 %v643_v47, %v583_v34 }
 0x1f2   :  { %v832_v50 = vpack.c.bf16 %v660_v48, %v659_v49 }
 0x1f4   :  { %840 = vst [vmem:[%s1253_s5 + $0x38] sm:$0xff] %v832_v50  }

</bundles_post_ra>
